<compile_context>
chip_gen: v7x
topology: tpu7x:2x2x1
jax: 0.10.0
libtpu: 0.0.40
codegen_flags: <defaults>
</compile_context>

<pallas_src>
import functools

import jax
import jax.numpy as jnp
from jax import lax
from jax.experimental import pallas as pl
from jax.experimental.pallas import tpu as pltpu

_VMEM = pl.BlockSpec(memory_space=pltpu.MemorySpace.VMEM)


def _round_up(x, m):
    return ((x + m - 1) // m) * m


def _vmem_cap_bytes():
    """Per-generation VMEM budget (~15% headroom for Mosaic internal scratch)."""
    cap = 128 << 20
    try:
        info = pltpu.get_tpu_info()
        cap = int(getattr(info, "vmem_capacity_bytes", cap))
    except Exception:
        pass
    return int(cap * 0.85)


# ----------------------------------------------------------------------------
# Fused Pallas kernel: (optional) attention + all propagation steps.
# ----------------------------------------------------------------------------
def _twirls_fused_kernel(mask_ref, x_ref, etas_ref, o_ref, w_scr, dis_scr, *,
                         alp, lam, tau, T, p, n_pre, n_post,
                         init_att, attn_mid, precond, matmul_dtype, attn_blk):
    Np, dp = x_ref.shape
    X = x_ref[...]                                        # (Np, dp) f32

    def dis_from_deg(deg):
        if precond:
            return lax.rsqrt(lam * deg + (1.0 - lam))     # (lam*D+(1-lam)I)^-1/2
        return lax.rsqrt(deg)                             # D^-1/2

    def set_graph_plain():
        """edata['w'] = 1 on edges, deg = in-degrees (no attention yet)."""
        m = mask_ref[...]                                 # int8 0/1
        w_scr[...] = m.astype(matmul_dtype)
        deg = jnp.sum(m.astype(jnp.float32), axis=1, keepdims=True)
        dis_scr[...] = dis_from_deg(deg)

    def reweight(w):
        """relu + eps, ^(1-p/2), clamp-to-tau, T-threshold, invert (dense)."""
        w = jnp.maximum(w, 0.0) + 1e-7
        if p == 1.0:
            # 1/max(sqrt(w), tau) == min(rsqrt(w), 1/tau): one EUP op / element.
            inv_tau = (1.0 / tau) if tau > 0 else float("inf")
            inv = jnp.minimum(lax.rsqrt(w), inv_tau)
            if T > 0:
                if tau > T:                 # clamped value always > T -> all 0
                    inv = jnp.zeros_like(inv)
                else:                       # sqrt(w) > T  <=>  w > T^2
                    inv = jnp.where(w > T * T, 0.0, inv)
        else:
            wp = jnp.exp(jnp.log(w) * (1.0 - 0.5 * p))    # w ** (1 - p/2)
            wp = jnp.maximum(wp, tau)
            if T > 0:
                inv = jnp.where(wp > T, 0.0, 1.0 / wp)    # > T -> inf -> 0
            else:
                inv = 1.0 / wp
        return inv

    def attention(Y):
        """Attention.forward + reweighting + degree recompute (dense, blocked)."""
        Ys = Y * etas_ref[...]                            # (Np, dp) f32
        Ys2 = Ys * Ys
        norms = jnp.sum(Ys2, axis=-1, keepdims=True)      # (Np, 1) = ||Y_i||^2
        # ||Y_j||^2 laid out along lanes via one tiny MXU matmul (no transpose,
        # no spare feature column -> dp never grows):
        norms_row = lax.dot_general(jnp.ones((1, dp), jnp.float32), Ys2,
                                    (((1,), (1,)), ((), ())),
                                    preferred_element_type=jnp.float32)  # (1, Np)
        B = -2.0 * Ys                                     # (Np, dp)

        # Row-blocked post-processing: only O(attn_blk x Np) f32 live at once.
        for b in range(Np // attn_blk):
            r0 = b * attn_blk
            w = lax.dot_general(Ys[r0:r0 + attn_blk, :], B,
                                (((1,), (1,)), ((), ())),
                                preferred_element_type=jnp.float32)      # -2<Yi,Yj>
            w = w + norms[r0:r0 + attn_blk, :] + norms_row               # sq. dist
            inv = reweight(w)
            m_blk = mask_ref[r0:r0 + attn_blk, :].astype(jnp.float32)    # 0/1
            Wb = (inv + 1e-9) * m_blk
            w_scr[r0:r0 + attn_blk, :] = Wb.astype(matmul_dtype)
            deg_b = jnp.sum(Wb, axis=1, keepdims=True)
            dis_scr[r0:r0 + attn_blk, :] = dis_from_deg(deg_b)

    def run_props(Y, n_steps):
        if n_steps <= 0:
            return Y
        dis = dis_scr[...]                                # (Np, 1), constant segment
        dis_b = jnp.broadcast_to(dis, (Np, dp))           # hoisted lane broadcast
        if precond:
            xterm = (alp * dis * dis) * X                 # alp*(lam*D+(1-lam)I)^-1 X
            coef_y = 1.0 - alp
        else:
            xterm = alp * X
            coef_y = 1.0 - alp * lam - alp
        al = alp * lam

        def step(Yk):
            Ys = (Yk * dis_b).astype(matmul_dtype)
            AY = jnp.dot(w_scr[...], Ys, preferred_element_type=jnp.float32)
            return coef_y * Yk + al * (AY * dis_b) + xterm

        if n_steps <= 4:                  # short fixed trip count: static unroll
            for _ in range(n_steps):
                Y = step(Y)
            return Y
        return lax.fori_loop(0, n_steps, lambda _, Yk: step(Yk), Y)

    if init_att:
        attention(X)
    else:
        set_graph_plain()

    Y = run_props(X, n_pre)
    if attn_mid:
        attention(Y)
        Y = run_props(Y, n_post)
    o_ref[...] = Y


# ----------------------------------------------------------------------------
# Wrapper: padding, dtype plumbing, single pallas_call.
# ----------------------------------------------------------------------------
def twirls_forward_pallas(mask, X, etas, *, alp, lam, tau, T, p, prop_step,
                          attn_aft, init_att, precond,
                          matmul_dtype=jnp.bfloat16):
    N, d = X.shape
    attn_mid = (1 <= attn_aft <= prop_step)
    need_attn = bool(init_att) or attn_mid
    n_pre = attn_aft if attn_mid else prop_step
    n_post = prop_step - attn_aft if attn_mid else 0

    # Feature dim lane-dense (128); node dim aligned to int8 sublane tile (32).
    dp = _round_up(max(d, 1), 128)
    Np = _round_up(max(N, 1), 32)

    Xp = jnp.zeros((Np, dp), jnp.float32).at[:N, :d].set(X.astype(jnp.float32))

    etasp = jnp.ones((1, dp), jnp.float32)
    if etas is not None:
        e = jnp.asarray(etas, jnp.float32).reshape(-1)[:d]
        etasp = etasp.at[0, :e.shape[0]].set(e)

    maskp = jnp.zeros((Np, Np), jnp.int8).at[:N, :N].set(
        (jnp.asarray(mask) != 0).astype(jnp.int8))
    if Np > N:   # self-loops on padding nodes keep their degree > 0 (no inf/NaN)
        pad = jnp.arange(N, Np)
        maskp = maskp.at[pad, pad].set(1)

    # Attention row-block size: largest {256,128,64,32} that divides Np.
    attn_blk = 32
    for cand in (256, 128, 64, 32):
        if Np % cand == 0:
            attn_blk = cand
            break

    kern = functools.partial(
        _twirls_fused_kernel, alp=float(alp), lam=float(lam), tau=float(tau),
        T=float(T), p=float(p), n_pre=int(n_pre), n_post=int(n_post),
        init_att=bool(init_att), attn_mid=bool(attn_mid), precond=bool(precond),
        matmul_dtype=matmul_dtype, attn_blk=int(attn_blk))

    # Whole-graph-in-VMEM budget: W scratch + int8 mask + transient f32 N^2 cast
    # (plain set_graph) + feature-sized temporaries + blocked attention temps.
    w_bytes = jnp.dtype(matmul_dtype).itemsize
    est = (Np * Np * (w_bytes + 1 + 4)
           + Np * dp * 4 * 8
           + (attn_blk * Np * 4 * 4 if need_attn else 0)
           + (4 << 20))
    vmem_limit = int(min(_vmem_cap_bytes(), max(32 << 20, est)))
    # TODO(synk): for graphs beyond a few thousand nodes the dense (N,N) W no
    # longer fits VMEM; a tiled grid/BlockSpec variant is needed.

    out = pl.pallas_call(
        kern,
        out_shape=jax.ShapeDtypeStruct((Np, dp), jnp.float32),
        in_specs=[_VMEM, _VMEM, _VMEM],
        out_specs=_VMEM,
        scratch_shapes=[pltpu.VMEM((Np, Np), matmul_dtype),   # W, resident across steps
                        pltpu.VMEM((Np, 1), jnp.float32)],    # per-node D^{-1/2} scalars
        compiler_params=pltpu.CompilerParams(vmem_limit_bytes=vmem_limit),
    )(maskp, Xp, etasp)
    return out[:N, :d]


# ----------------------------------------------------------------------------
# Pure-JAX reference (mirrors the PyTorch module exactly) for self-validation.
# ----------------------------------------------------------------------------
def twirls_forward_ref(mask, X, etas, *, alp, lam, tau, T, p, prop_step,
                       attn_aft, init_att, precond):
    X = X.astype(jnp.float32)
    edge = jnp.asarray(mask) != 0
    HI = jax.lax.Precision.HIGHEST

    def attention(Y):
        Ys = Y if etas is None else Y * jnp.asarray(etas, jnp.float32).reshape(-1)
        norms = jnp.sum(Ys * Ys, axis=-1)
        dot = jnp.dot(Ys, Ys.T, precision=HI)
        w = norms[:, None] + norms[None, :] - 2.0 * dot
        w = jnp.maximum(w, 0.0) + 1e-7
        w = w ** (1.0 - 0.5 * p)
        w = jnp.maximum(w, tau)
        if T > 0:
            w = jnp.where(w > T, jnp.inf, w)
        w = 1.0 / w + 1e-9
        W = jnp.where(edge, w, 0.0)
        return W, jnp.sum(W, axis=1, keepdims=True)

    def prop(W, deg, Y):
        if precond:
            db = lam * deg + (1.0 - lam)
            ds = db ** -0.5
            return (1.0 - alp) * Y + alp * lam * (ds * jnp.dot(W, ds * Y, precision=HI)) \
                   + alp * (db ** -1.0) * X
        ds = deg ** -0.5
        return (1.0 - alp * lam - alp) * Y \
               + alp * lam * (ds * jnp.dot(W, ds * Y, precision=HI)) + alp * X

    W = edge.astype(jnp.float32)
    deg = jnp.sum(W, axis=1, keepdims=True)
    Y = X
    if init_att:
        W, deg = attention(Y)
    for k in range(prop_step):
        Y = prop(W, deg, Y)
        if k == attn_aft - 1:
            W, deg = attention(Y)
    return Y


# ----------------------------------------------------------------------------
# Module
# ----------------------------------------------------------------------------
class TWIRLSUnfoldingAndAttentionPallas:
    def __init__(self, d, alp, lam, prop_step, attn_aft=-1, tau=0.2, T=-1,
                 p=1, use_eta=False, init_att=False, attn_dropout=0,
                 precond=True, matmul_dtype=jnp.bfloat16):
        self.d = d
        self.alp = float(alp) if alp > 0 else 1.0 / (lam + 1)
        self.lam = float(lam)
        self.tau = float(tau)
        self.T = float(T)
        self.p = float(p)
        self.prop_step = int(prop_step)
        self.attn_aft = int(attn_aft)
        self.init_att = bool(init_att)
        self.precond = bool(precond)
        self.matmul_dtype = matmul_dtype
        # nn.Parameter(torch.ones(d)) when use_eta; etas=None means no scaling.
        self.etas = jnp.ones((d,), jnp.float32) if use_eta else None
        # TODO(synk): attn_dropout > 0 (training-mode dropout on edge weights) is
        # not implemented; the module default (0.0) is a no-op.

    def _params(self):
        return dict(alp=self.alp, lam=self.lam, tau=self.tau, T=self.T, p=self.p,
                    prop_step=self.prop_step, attn_aft=self.attn_aft,
                    init_att=self.init_att, precond=self.precond)

    def __call__(self, mask, X, use_pallas=True):
        if use_pallas:
            return twirls_forward_pallas(mask, X, self.etas,
                                         matmul_dtype=self.matmul_dtype,
                                         **self._params())
        return twirls_forward_ref(mask, X, self.etas, **self._params())


# ----------------------------------------------------------------------------
# Demo / self-check
# ----------------------------------------------------------------------------
if __name__ == "__main__":
    key = jax.random.PRNGKey(0)
    N, d = 8, 32

    # Small deterministic directed graph with self loops (mask[dst, src] = 1).
    src = jnp.array([0, 1, 2, 3, 2, 5, 6, 7, 4, 1], dtype=jnp.int32)
    dst = jnp.array([1, 2, 3, 4, 0, 3, 7, 0, 6, 5], dtype=jnp.int32)
    mask = jnp.zeros((N, N), jnp.float32)
    mask = mask.at[dst, src].set(1.0)
    mask = mask.at[jnp.arange(N), jnp.arange(N)].set(1.0)   # add_self_loop

    X = jax.random.normal(key, (N, d), dtype=jnp.float32)

    # 1) f32 path: preconditioned propagation, init attention + attention after 2 steps
    m1 = TWIRLSUnfoldingAndAttentionPallas(d, alp=1.0, lam=1.0, prop_step=3,
                                           attn_aft=2, tau=0.2, T=-1, p=1,
                                           use_eta=True, init_att=True, precond=True,
                                           matmul_dtype=jnp.float32)
    out1 = jax.block_until_ready(m1(mask, X, use_pallas=True))
    ref1 = m1(mask, X, use_pallas=False)
    assert jnp.allclose(out1, ref1, rtol=1e-3, atol=1e-3), "precond+attention mismatch"

    # 2) f32 path: normalized-laplacian propagation, T-thresholded attention after 1 step
    m2 = TWIRLSUnfoldingAndAttentionPallas(d, alp=0.0, lam=2.0, prop_step=4,
                                           attn_aft=1, tau=0.2, T=2.0, p=1,
                                           use_eta=False, init_att=False, precond=False,
                                           matmul_dtype=jnp.float32)
    out2 = jax.block_until_ready(m2(mask, X, use_pallas=True))
    ref2 = m2(mask, X, use_pallas=False)
    assert jnp.allclose(out2, ref2, rtol=1e-3, atol=1e-3), "noprecond mismatch"

    # 3) the DGL docstring example (6 nodes, 5 feats, ones, no attention).
    #    d=10 (module arg) != feature dim 5, as in the DGL docstring (etas unused).
    src3 = jnp.array([0, 1, 2, 3, 2, 5, 0, 1, 2, 3, 4, 5], dtype=jnp.int32)
    dst3 = jnp.array([1, 2, 3, 4, 0, 3, 0, 1, 2, 3, 4, 5], dtype=jnp.int32)
    mask3 = jnp.zeros((6, 6), jnp.float32).at[dst3, src3].set(1.0)
    feat = jnp.ones((6, 5), jnp.float32)
    expected3 = jnp.array([2.5, 2.5, 2.5, 3.7656, 2.5217, 4.0],
                          dtype=jnp.float32)[:, None] * jnp.ones((1, 5), jnp.float32)

    m3f = TWIRLSUnfoldingAndAttentionPallas(10, alp=1.0, lam=1.0, prop_step=3,
                                            matmul_dtype=jnp.float32)
    out3f = jax.block_until_ready(m3f(mask3, feat, use_pallas=True))
    assert jnp.allclose(out3f, expected3, atol=1e-3), "docstring example (f32) mismatch"

    m3 = TWIRLSUnfoldingAndAttentionPallas(10, alp=1.0, lam=1.0, prop_step=3)  # bf16 default
    out3 = jax.block_until_ready(m3(mask3, feat, use_pallas=True))
    assert jnp.allclose(out3, expected3, atol=1e-1), "docstring example (bf16) mismatch"

    # 4) general p != 1 reweighting path (exp/log power branch), f32
    m4 = TWIRLSUnfoldingAndAttentionPallas(d, alp=0.7, lam=1.5, prop_step=2,
                                           attn_aft=1, tau=0.3, T=-1, p=1.5,
                                           use_eta=False, init_att=False, precond=True,
                                           matmul_dtype=jnp.float32)
    out4 = jax.block_until_ready(m4(mask, X, use_pallas=True))
    ref4 = m4(mask, X, use_pallas=False)
    assert jnp.allclose(out4, ref4, rtol=1e-3, atol=1e-3), "general-p mismatch"

    # 5) default bf16 W / bf16 propagation matmul (MXU-rate path); coarse check vs f32 ref.
    m5 = TWIRLSUnfoldingAndAttentionPallas(d, alp=1.0, lam=1.0, prop_step=3,
                                           attn_aft=2, tau=0.2, T=-1, p=1,
                                           use_eta=True, init_att=True, precond=True)
    out5 = jax.block_until_ready(m5(mask, X, use_pallas=True))
    assert jnp.allclose(out5, ref1, rtol=1e-1, atol=1e-1), "bf16 default path mismatch"

    print("KERNEL_OK")
</pallas_src>

<mosaic_0001>
module attributes {stable_mosaic.version = 11 : i64} {
  func.func @_twirls_fused_kernel(%arg0: memref<32x32xi8, #tpu.memory_space<vmem>>, %arg1: memref<32x128xf32, #tpu.memory_space<vmem>>, %arg2: memref<1x128xf32, #tpu.memory_space<vmem>>, %arg3: memref<32x128xf32, #tpu.memory_space<vmem>>, %arg4: memref<32x32xf32, #tpu.memory_space<vmem>>, %arg5: memref<32x1xf32, #tpu.memory_space<vmem>>) attributes {dimension_semantics = [], scalar_prefetch = 0 : i64, scratch_operands = 2 : i64, tpu.core_type = #tpu.core_type<tc>} {
    %c0 = arith.constant 0 : index
    %c0_0 = arith.constant 0 : index
    %0 = vector.load %arg1[%c0, %c0_0] : memref<32x128xf32, #tpu.memory_space<vmem>>, vector<32x128xf32>
    %c0_1 = arith.constant 0 : index
    %c0_2 = arith.constant 0 : index
    %1 = vector.load %arg2[%c0_1, %c0_2] : memref<1x128xf32, #tpu.memory_space<vmem>>, vector<1x128xf32>
    %2 = vector.broadcast %1 : vector<1x128xf32> to vector<32x128xf32>
    %3 = arith.mulf %0, %2 : vector<32x128xf32>
    %4 = arith.mulf %3, %3 : vector<32x128xf32>
    %cst = arith.constant dense<0.000000e+00> : vector<32xf32>
    %5 = vector.multi_reduction <add>, %4, %cst [1] : vector<32x128xf32> to vector<32xf32>
    %6 = vector.shape_cast %5 : vector<32xf32> to vector<32x1xf32>
    %cst_3 = arith.constant 1.000000e+00 : f32
    %7 = vector.broadcast %cst_3 : f32 to vector<1x128xf32>
    %cst_4 = arith.constant dense<0.000000e+00> : vector<1x32xf32>
    %8 = tpu.matmul %7, %4, %cst_4 {dimension_numbers = #tpu.dot_dimension_numbers<[1], [1], [0], [0], [0, 0, 1, 0], [], []>} : vector<1x128xf32>, vector<32x128xf32>, vector<1x32xf32> -> vector<1x32xf32>
    %cst_5 = arith.constant -2.000000e+00 : f32
    %9 = vector.broadcast %cst_5 : f32 to vector<32x128xf32>
    %10 = arith.mulf %9, %3 : vector<32x128xf32>
    %cst_6 = arith.constant dense<0.000000e+00> : vector<32x32xf32>
    %11 = tpu.matmul %3, %10, %cst_6 {dimension_numbers = #tpu.dot_dimension_numbers<[1], [1], [0], [0], [0, 0, 1, 0], [], []>} : vector<32x128xf32>, vector<32x128xf32>, vector<32x32xf32> -> vector<32x32xf32>
    %12 = vector.broadcast %6 : vector<32x1xf32> to vector<32x32xf32>
    %13 = arith.addf %11, %12 : vector<32x32xf32>
    %14 = vector.broadcast %8 : vector<1x32xf32> to vector<32x32xf32>
    %15 = arith.addf %13, %14 : vector<32x32xf32>
    %cst_7 = arith.constant 0.000000e+00 : f32
    %16 = vector.broadcast %cst_7 : f32 to vector<32x32xf32>
    %17 = arith.maximumf %15, %16 : vector<32x32xf32>
    %cst_8 = arith.constant 1.000000e-07 : f32
    %18 = vector.broadcast %cst_8 : f32 to vector<32x32xf32>
    %19 = arith.addf %17, %18 : vector<32x32xf32>
    %20 = math.rsqrt %19 : vector<32x32xf32>
    %cst_9 = arith.constant 5.000000e+00 : f32
    %21 = vector.broadcast %cst_9 : f32 to vector<32x32xf32>
    %22 = arith.minimumf %20, %21 : vector<32x32xf32>
    %c0_10 = arith.constant 0 : index
    %c0_11 = arith.constant 0 : index
    %23 = vector.load %arg0[%c0_10, %c0_11] : memref<32x32xi8, #tpu.memory_space<vmem>>, vector<32x32xi8>
    %24 = arith.sitofp %23 : vector<32x32xi8> to vector<32x32xf32>
    %cst_12 = arith.constant 9.99999971E-10 : f32
    %25 = vector.broadcast %cst_12 : f32 to vector<32x32xf32>
    %26 = arith.addf %22, %25 : vector<32x32xf32>
    %27 = arith.mulf %26, %24 : vector<32x32xf32>
    %c0_13 = arith.constant 0 : index
    %c0_14 = arith.constant 0 : index
    %28 = vector.load %arg4[%c0_13, %c0_14] : memref<32x32xf32, #tpu.memory_space<vmem>>, vector<32x32xf32>
    tpu.vector_store %arg4[%c0_13, %c0_14], %27 {strides = array<i32>} : memref<32x32xf32, #tpu.memory_space<vmem>>, vector<32x32xf32>,
    %cst_15 = arith.constant dense<0.000000e+00> : vector<32xf32>
    %29 = vector.multi_reduction <add>, %27, %cst_15 [1] : vector<32x32xf32> to vector<32xf32>
    %30 = vector.shape_cast %29 : vector<32xf32> to vector<32x1xf32>
    %cst_16 = arith.constant 1.000000e+00 : f32
    %31 = vector.broadcast %cst_16 : f32 to vector<32x1xf32>
    %32 = arith.mulf %31, %30 : vector<32x1xf32>
    %cst_17 = arith.constant 0.000000e+00 : f32
    %33 = vector.broadcast %cst_17 : f32 to vector<32x1xf32>
    %34 = arith.addf %32, %33 : vector<32x1xf32>
    %35 = math.rsqrt %34 : vector<32x1xf32>
    %c0_18 = arith.constant 0 : index
    %c0_19 = arith.constant 0 : index
    %36 = vector.load %arg5[%c0_18, %c0_19] : memref<32x1xf32, #tpu.memory_space<vmem>>, vector<32x1xf32>
    tpu.vector_store %arg5[%c0_18, %c0_19], %35 {strides = array<i32>} : memref<32x1xf32, #tpu.memory_space<vmem>>, vector<32x1xf32>,
    %c0_20 = arith.constant 0 : index
    %c0_21 = arith.constant 0 : index
    %37 = vector.load %arg5[%c0_20, %c0_21] : memref<32x1xf32, #tpu.memory_space<vmem>>, vector<32x1xf32>
    %38 = vector.shape_cast %37 : vector<32x1xf32> to vector<32x1xf32>
    %39 = vector.broadcast %38 : vector<32x1xf32> to vector<32x128xf32>
    %cst_22 = arith.constant 1.000000e+00 : f32
    %40 = vector.broadcast %cst_22 : f32 to vector<32x1xf32>
    %41 = arith.mulf %40, %37 : vector<32x1xf32>
    %42 = arith.mulf %41, %37 : vector<32x1xf32>
    %43 = vector.broadcast %42 : vector<32x1xf32> to vector<32x128xf32>
    %44 = arith.mulf %43, %0 : vector<32x128xf32>
    %45 = arith.mulf %0, %39 : vector<32x128xf32>
    %c0_23 = arith.constant 0 : index
    %c0_24 = arith.constant 0 : index
    %46 = vector.load %arg4[%c0_23, %c0_24] : memref<32x32xf32, #tpu.memory_space<vmem>>, vector<32x32xf32>
    %cst_25 = arith.constant dense<0.000000e+00> : vector<32x128xf32>
    %47 = tpu.matmul %46, %45, %cst_25 {dimension_numbers = #tpu.dot_dimension_numbers<[1], [0], [0], [1], [0, 0, 1, 1], [], []>} : vector<32x32xf32>, vector<32x128xf32>, vector<32x128xf32> -> vector<32x128xf32>
    %cst_26 = arith.constant 0.000000e+00 : f32
    %48 = vector.broadcast %cst_26 : f32 to vector<32x128xf32>
    %49 = arith.mulf %48, %0 : vector<32x128xf32>
    %50 = arith.mulf %47, %39 : vector<32x128xf32>
    %cst_27 = arith.constant 1.000000e+00 : f32
    %51 = vector.broadcast %cst_27 : f32 to vector<32x128xf32>
    %52 = arith.mulf %51, %50 : vector<32x128xf32>
    %53 = arith.addf %49, %52 : vector<32x128xf32>
    %54 = arith.addf %53, %44 : vector<32x128xf32>
    %55 = arith.mulf %54, %39 : vector<32x128xf32>
    %c0_28 = arith.constant 0 : index
    %c0_29 = arith.constant 0 : index
    %56 = vector.load %arg4[%c0_28, %c0_29] : memref<32x32xf32, #tpu.memory_space<vmem>>, vector<32x32xf32>
    %cst_30 = arith.constant dense<0.000000e+00> : vector<32x128xf32>
    %57 = tpu.matmul %56, %55, %cst_30 {dimension_numbers = #tpu.dot_dimension_numbers<[1], [0], [0], [1], [0, 0, 1, 1], [], []>} : vector<32x32xf32>, vector<32x128xf32>, vector<32x128xf32> -> vector<32x128xf32>
    %cst_31 = arith.constant 0.000000e+00 : f32
    %58 = vector.broadcast %cst_31 : f32 to vector<32x128xf32>
    %59 = arith.mulf %58, %54 : vector<32x128xf32>
    %60 = arith.mulf %57, %39 : vector<32x128xf32>
    %cst_32 = arith.constant 1.000000e+00 : f32
    %61 = vector.broadcast %cst_32 : f32 to vector<32x128xf32>
    %62 = arith.mulf %61, %60 : vector<32x128xf32>
    %63 = arith.addf %59, %62 : vector<32x128xf32>
    %64 = arith.addf %63, %44 : vector<32x128xf32>
    %c0_33 = arith.constant 0 : index
    %c0_34 = arith.constant 0 : index
    %65 = vector.load %arg2[%c0_33, %c0_34] : memref<1x128xf32, #tpu.memory_space<vmem>>, vector<1x128xf32>
    %66 = vector.broadcast %65 : vector<1x128xf32> to vector<32x128xf32>
    %67 = arith.mulf %64, %66 : vector<32x128xf32>
    %68 = arith.mulf %67, %67 : vector<32x128xf32>
    %cst_35 = arith.constant dense<0.000000e+00> : vector<32xf32>
    %69 = vector.multi_reduction <add>, %68, %cst_35 [1] : vector<32x128xf32> to vector<32xf32>
    %70 = vector.shape_cast %69 : vector<32xf32> to vector<32x1xf32>
    %cst_36 = arith.constant 1.000000e+00 : f32
    %71 = vector.broadcast %cst_36 : f32 to vector<1x128xf32>
    %cst_37 = arith.constant dense<0.000000e+00> : vector<1x32xf32>
    %72 = tpu.matmul %71, %68, %cst_37 {dimension_numbers = #tpu.dot_dimension_numbers<[1], [1], [0], [0], [0, 0, 1, 0], [], []>} : vector<1x128xf32>, vector<32x128xf32>, vector<1x32xf32> -> vector<1x32xf32>
    %cst_38 = arith.constant -2.000000e+00 : f32
    %73 = vector.broadcast %cst_38 : f32 to vector<32x128xf32>
    %74 = arith.mulf %73, %67 : vector<32x128xf32>
    %cst_39 = arith.constant dense<0.000000e+00> : vector<32x32xf32>
    %75 = tpu.matmul %67, %74, %cst_39 {dimension_numbers = #tpu.dot_dimension_numbers<[1], [1], [0], [0], [0, 0, 1, 0], [], []>} : vector<32x128xf32>, vector<32x128xf32>, vector<32x32xf32> -> vector<32x32xf32>
    %76 = vector.broadcast %70 : vector<32x1xf32> to vector<32x32xf32>
    %77 = arith.addf %75, %76 : vector<32x32xf32>
    %78 = vector.broadcast %72 : vector<1x32xf32> to vector<32x32xf32>
    %79 = arith.addf %77, %78 : vector<32x32xf32>
    %cst_40 = arith.constant 0.000000e+00 : f32
    %80 = vector.broadcast %cst_40 : f32 to vector<32x32xf32>
    %81 = arith.maximumf %79, %80 : vector<32x32xf32>
    %cst_41 = arith.constant 1.000000e-07 : f32
    %82 = vector.broadcast %cst_41 : f32 to vector<32x32xf32>
    %83 = arith.addf %81, %82 : vector<32x32xf32>
    %84 = math.rsqrt %83 : vector<32x32xf32>
    %cst_42 = arith.constant 5.000000e+00 : f32
    %85 = vector.broadcast %cst_42 : f32 to vector<32x32xf32>
    %86 = arith.minimumf %84, %85 : vector<32x32xf32>
    %c0_43 = arith.constant 0 : index
    %c0_44 = arith.constant 0 : index
    %87 = vector.load %arg0[%c0_43, %c0_44] : memref<32x32xi8, #tpu.memory_space<vmem>>, vector<32x32xi8>
    %88 = arith.sitofp %87 : vector<32x32xi8> to vector<32x32xf32>
    %cst_45 = arith.constant 9.99999971E-10 : f32
    %89 = vector.broadcast %cst_45 : f32 to vector<32x32xf32>
    %90 = arith.addf %86, %89 : vector<32x32xf32>
    %91 = arith.mulf %90, %88 : vector<32x32xf32>
    %c0_46 = arith.constant 0 : index
    %c0_47 = arith.constant 0 : index
    %92 = vector.load %arg4[%c0_46, %c0_47] : memref<32x32xf32, #tpu.memory_space<vmem>>, vector<32x32xf32>
    tpu.vector_store %arg4[%c0_46, %c0_47], %91 {strides = array<i32>} : memref<32x32xf32, #tpu.memory_space<vmem>>, vector<32x32xf32>,
    %cst_48 = arith.constant dense<0.000000e+00> : vector<32xf32>
    %93 = vector.multi_reduction <add>, %91, %cst_48 [1] : vector<32x32xf32> to vector<32xf32>
    %94 = vector.shape_cast %93 : vector<32xf32> to vector<32x1xf32>
    %cst_49 = arith.constant 1.000000e+00 : f32
    %95 = vector.broadcast %cst_49 : f32 to vector<32x1xf32>
    %96 = arith.mulf %95, %94 : vector<32x1xf32>
    %cst_50 = arith.constant 0.000000e+00 : f32
    %97 = vector.broadcast %cst_50 : f32 to vector<32x1xf32>
    %98 = arith.addf %96, %97 : vector<32x1xf32>
    %99 = math.rsqrt %98 : vector<32x1xf32>
    %c0_51 = arith.constant 0 : index
    %c0_52 = arith.constant 0 : index
    %100 = vector.load %arg5[%c0_51, %c0_52] : memref<32x1xf32, #tpu.memory_space<vmem>>, vector<32x1xf32>
    tpu.vector_store %arg5[%c0_51, %c0_52], %99 {strides = array<i32>} : memref<32x1xf32, #tpu.memory_space<vmem>>, vector<32x1xf32>,
    %c0_53 = arith.constant 0 : index
    %c0_54 = arith.constant 0 : index
    %101 = vector.load %arg5[%c0_53, %c0_54] : memref<32x1xf32, #tpu.memory_space<vmem>>, vector<32x1xf32>
    %102 = vector.shape_cast %101 : vector<32x1xf32> to vector<32x1xf32>
    %103 = vector.broadcast %102 : vector<32x1xf32> to vector<32x128xf32>
    %cst_55 = arith.constant 1.000000e+00 : f32
    %104 = vector.broadcast %cst_55 : f32 to vector<32x1xf32>
    %105 = arith.mulf %104, %101 : vector<32x1xf32>
    %106 = arith.mulf %105, %101 : vector<32x1xf32>
    %107 = vector.broadcast %106 : vector<32x1xf32> to vector<32x128xf32>
    %108 = arith.mulf %107, %0 : vector<32x128xf32>
    %109 = arith.mulf %64, %103 : vector<32x128xf32>
    %c0_56 = arith.constant 0 : index
    %c0_57 = arith.constant 0 : index
    %110 = vector.load %arg4[%c0_56, %c0_57] : memref<32x32xf32, #tpu.memory_space<vmem>>, vector<32x32xf32>
    %cst_58 = arith.constant dense<0.000000e+00> : vector<32x128xf32>
    %111 = tpu.matmul %110, %109, %cst_58 {dimension_numbers = #tpu.dot_dimension_numbers<[1], [0], [0], [1], [0, 0, 1, 1], [], []>} : vector<32x32xf32>, vector<32x128xf32>, vector<32x128xf32> -> vector<32x128xf32>
    %cst_59 = arith.constant 0.000000e+00 : f32
    %112 = vector.broadcast %cst_59 : f32 to vector<32x128xf32>
    %113 = arith.mulf %112, %64 : vector<32x128xf32>
    %114 = arith.mulf %111, %103 : vector<32x128xf32>
    %cst_60 = arith.constant 1.000000e+00 : f32
    %115 = vector.broadcast %cst_60 : f32 to vector<32x128xf32>
    %116 = arith.mulf %115, %114 : vector<32x128xf32>
    %117 = arith.addf %113, %116 : vector<32x128xf32>
    %118 = arith.addf %117, %108 : vector<32x128xf32>
    %c0_61 = arith.constant 0 : index
    %c0_62 = arith.constant 0 : index
    %119 = vector.load %arg3[%c0_61, %c0_62] : memref<32x128xf32, #tpu.memory_space<vmem>>, vector<32x128xf32>
    tpu.vector_store %arg3[%c0_61, %c0_62], %118 {strides = array<i32>} : memref<32x128xf32, #tpu.memory_space<vmem>>, vector<32x128xf32>,
    return
  }
}

</mosaic_0001>

<bundles_post_ra>
// kernel: tpu_custom_call.1
= control target key start
LH: loop header
LB: loop body
LE: loop exit
PB: predicated region body
PF: predicated region fallthrough
CT: control target
= control target key end

     0   :  { %8 = vsyncpa [#allocation5], 0  ;;  %s1583_s0 = inlined_call_operand.hbm [shape: s8[32,32], index: 0, kind: input, shape index: {}]   ;;  %s1584_s1 = inlined_call_operand.hbm [shape: f32[32,128], index: 1, kind: input, shape index: {}]   ;;  %s1585_s2 = inlined_call_operand.vmem [shape: f32[1,128], index: 2, kind: input, shape index: {}]   ;;  %s1586_s3 = inlined_call_operand.hbm [shape: f32[32,128], index: 3, kind: output, shape index: {}]  }
   0x1   :  { %9 = vsyncpa [#allocation8], 0 }
   0x2   :  { %10 = vsyncpa [#allocation6], 0  ;;  %s1350_s12 = smov [#allocation4]   ;;  %s1351_s14 = smov [#allocation7]  }
   0x3   :  { %s17_s13 = sshll.u32 %s1350_s12, 4  ;;  %s26_s15 = sshll.u32 %s1351_s14, 4  ;;  %s18_s13 = int_to_ptr.vmem [resolvable:$true] %s17_s13  ;;  %s1380_s15 = int_to_ptr.vmem [resolvable:$true] %s26_s15 }
   0x4   :  { %s1278_s18 = scalar_lea.hbm %s1583_s0, 128 }
   0x5   :  { %p1279_p0 = scmp.ne.s32.totalorder %s1583_s0, %s1278_s18  ;;  %p1282_p1 = scmp.lt.u32.totalorder %s1278_s18, %s1583_s0 }
   0x7   :  { %p1284_p2 = pnand %p1282_p1, %p1279_p0 }
   0x9   :  { %1287 = shalt.err (!%p1284_p2)
}
   0xa   :  { %s1288_s23 = scalar_lea.vmem %s18_s13, 128  ;;  %p1293_p4 = scmp.lt.s32.totalorder %s18_s13, %s18_s13 }
   0xb   :  { %p1289_p3 = scmp.ne.s32.totalorder %s18_s13, %s1288_s23  ;;  %p1294_p5 = scmp.lt.s32.totalorder %s1288_s23, %s1288_s23 }
   0xd   :  { %p1295_p6 = por %p1294_p5, %p1293_p4 }
   0xf   :  { %p1296_p7 = pnand %p1295_p6, %p1289_p3 }
  0x11   :  { %1299 = shalt.err (!%p1296_p7)
}
  0x12   :  { %20 = dma.hbm_to_vmem [thread:$0]  %s1583_s0, 128, %s18_s13, [#allocation5]  }
  0x13   :  { %s1300_s28 = scalar_lea.hbm %s1584_s1, 512 }
  0x14   :  { %p1301_p8 = scmp.ne.s32.totalorder %s1584_s1, %s1300_s28  ;;  %p1304_p9 = scmp.lt.u32.totalorder %s1300_s28, %s1584_s1 }
  0x16   :  { %p1306_p10 = pnand %p1304_p9, %p1301_p8 }
  0x18   :  { %1309 = shalt.err (!%p1306_p10)
}
  0x19   :  { %s1310_s6 = scalar_lea.vmem %s1380_s15, 512  ;;  %p1315_p12 = scmp.lt.s32.totalorder %s1380_s15, %s1380_s15 }
  0x1a   :  { %p1311_p11 = scmp.ne.s32.totalorder %s1380_s15, %s1310_s6  ;;  %p1316_p13 = scmp.lt.s32.totalorder %s1310_s6, %s1310_s6 }
  0x1c   :  { %p1317_p0 = por %p1316_p13, %p1315_p12 }
  0x1e   :  { %p1318_p1 = pnand %p1317_p0, %p1311_p11 }
  0x20   :  { %1321 = shalt.err (!%p1318_p1)
}
  0x21   :  { %s1352_s0 = smov 128   ;;  %s1353_s7 = smov 8  }
  0x22   :  { %32 = dma.hbm_to_vmem [thread:$0]  %s1584_s1, 512, %s1380_s15, [#allocation8], %s1352_s0, %s1352_s0, %s1353_s7  }
  0x23   :  { %1344 = dma.done.wait [#allocation5], 128  }
  0x24   :  { %1345 = vsyncadd [#allocation5], 4294967168 }
  0x25   :  { %1346 = dma.done.wait [#allocation8], 512  }
  0x26   :  { %1347 = vsyncadd [#allocation8], 4294966784  ;;  %v1354_v0 = vmov 0.0|0.0   ;;  %vm1355_vm0 = vmmov 0   ;;  %v1356_v1 = vmov 0.0   ;;  %v1417_v2 = vld [vmem:[#allocation7] sm:$0xff]  ;;  %v227_v24 = vlaneseq }
  0x27   :  { %1178 = vmatprep.subr.bf16.mxu0 %v1354_v0  ;;  %1094 = vmatprep.mubr.msk.f32.mxu0 %vm1355_vm0, %v1356_v1  ;;  %v1419_v3 = vld [vmem:[#allocation7 + $0x8] sm:$0xff]  ;;  %v1424_v4 = vld [vmem:[%s1585_s2] ss:$0 sm:$0xff]  ;;  %v1430_v7 = vld [vmem:[#allocation7 + $0x10] sm:$0xff]  ;;  %v1357_v23 = vmov 1.0   ;;  %vm268_vm1 = vcmask 261120  }
  0x28   :  { %v52_v5 = vmul.f32 %v1424_v4, %v1417_v2  ;;  %v53_v6 = vmul.f32 %v1424_v4, %v1419_v3  ;;  %v1432_v8 = vld [vmem:[#allocation7 + $0x18] sm:$0xff]  ;;  %v54_v9 = vmul.f32 %v1424_v4, %v1430_v7  ;;  %v1440_v26 = vshrl.u32 %v227_v24, 7  ;;  %s1359_s1 = smov [#allocation9]  }
  0x29   :  { %v55_v10 = vmul.f32 %v1424_v4, %v1432_v8  ;;  %v251_v54 = vld [vmem:[#allocation4] sm:$0xff]  ;;  %vm293_vm2 = vcmask 7168   ;;  %s1009_s2 = sshll.u32 %s1359_s1, 4  ;;  %s1010_s2 = int_to_ptr.vmem [resolvable:$true] %s1009_s2 }
  0x2a   :  { %v138_v11 = vmul.f32 -2.0, %v52_v5  ;;  %v139_v12 = vmul.f32 -2.0, %v53_v6  ;;  %v56_v13 = vmul.f32 %v52_v5, %v52_v5  ;;  %v57_v14 = vmul.f32 %v53_v6, %v53_v6  ;;  %1105 = vmatprep.mubr.f32.mxu1 %v52_v5  ;;  %s1322_s12 = scalar_lea.vmem %s1010_s2, 512  ;;  %p1327_p3 = scmp.lt.s32.totalorder %s1010_s2, %s1010_s2 }
  0x2b   :  { %v140_v15 = vmul.f32 -2.0, %v54_v9  ;;  %v141_v16 = vmul.f32 -2.0, %v55_v10  ;;  %v58_v17 = vmul.f32 %v54_v9, %v54_v9  ;;  %v59_v21 = vmul.f32 %v55_v10, %v55_v10  ;;  %p1323_p2 = scmp.ne.s32.totalorder %s1010_s2, %s1322_s12  ;;  %p1328_p4 = scmp.lt.s32.totalorder %s1322_s12, %s1322_s12 }
  0x2c   :  { %v1184_v18 = vpack.c.bf16 %v139_v12, %v138_v11  ;;  %v1179_v19 = vpack.c.bf16 %v57_v14, %v56_v13  ;;  %60 = vadd.xlane.f32.xlu0 %v56_v13  ;;  %v229_v28 = vsub.s32 0, %v1440_v26  ;;  %v253_v55 = vunpack.c.1.s8 %v251_v54 }
  0x2d   :  { %v1188_v20 = vpack.c.bf16 %v141_v16, %v140_v15  ;;  %64 = vadd.xlane.f32.xlu1 %v58_v17  ;;  %v1182_v22 = vpack.c.bf16 %v59_v21, %v58_v17  ;;  %v252_v56 = vunpack.c.0.s8 %v251_v54  ;;  %v255_v61 = vunpack.c.3.s8 %v251_v54  ;;  %p1329_p5 = por %p1328_p4, %p1327_p3 }
  0x2e   :  { %1185 = vmatprep.subr.bf16.mxu1 %v1184_v18  ;;  %1180 = vmatpush3.bf16.xpose.msra.mxu0 %v1179_v19  ;;  %v1445_v60 = vcvt.s32.f32 %v253_v55  ;;  %v254_v5 = vunpack.c.2.s8 %v251_v54 }
  0x2f   :  { %1187 = vmatpush3.bf16.xpose.msra.mxu1 %v1184_v18  ;;  %1181 = vmatprep.subr.bf16.mxu0 %v1354_v0  ;;  %v1447_v63 = vcvt.s32.f32 %v252_v56  ;;  %p1330_p6 = pnand %p1329_p5, %p1323_p2 }
  0x30   :  { %1189 = vmatprep.subr.bf16.mxu1 %v1188_v20  ;;  %62 = vadd.xlane.f32.xlu0 %v57_v14  ;;  %v1450_v14 = vcvt.s32.f32 %v255_v61  ;;  %v1453_v17 = vcvt.s32.f32 %v254_v5 }
  0x31   :  { %66 = vadd.xlane.f32.xlu1 %v59_v21 }
  0x36   :  { %1183 = vmatpush3.bf16.xpose.msra.mxu0 %v1182_v22 }
  0x37   :  { %1191 = vmatpush3.bf16.xpose.msra.mxu1 %v1188_v20 }
  0x3d   :  { %1095 = vmatmul.mubr.f32.vlgmr.msra.gmra.mrb[0].mxu0 %v1357_v23 }
  0x3e   :  { %1106 = vmatmul.mubr.f32.vlgmr.msra.gmra.mrb[0].mxu1 %v53_v6 }
  0x3f   :  { %1108 = vmatprep.mubr.f32.mxu1 %v54_v9 }
  0x42   :  { %1109 = vmatmul.mubr.f32.gmra.mrb[2].mxu1 %v55_v10 }
  0xb9   :  { %v61_v25 = vpop.xlane.xlu0 %60 }
  0xba   :  { %v65_v27 = vpop.xlane.xlu1 %64 }
  0xbd   :  { %v63_v29 = vpop.xlane.xlu0 %62 }
  0xbe   :  { %v67_v37 = vpop.xlane.xlu1 %66 }
 0x110   :  { %v134_v30 = vpop.f32.mrb[0].mxu0 }
 0x111   :  { %v1107_v31 = vpop.f32.mrb[0].mxu1  ;;  %v230_v32 = vrot.slane %v134_v30, %v229_v28  ;;  %v1096_v33 = vpop.f32.mrb[1].mxu0  ;;  %v1358_v30 = vmov 0  }
 0x112   :  { %v214_v34 = vadd.f32 %v1107_v31, %v63_v29  ;;  %v208_v35 = vpop.f32.mrb[1].mxu1  ;;  %1245 = vset.pattern.permute.xlu1 %v1358_v30  ;;  %1244 = vset.pattern.permute.xlu0 %v1358_v30 }
 0x113   :  { %v209_v36 = vadd.f32 %v208_v35, %v61_v25 }
 0x114   :  { %v232_v38 = vadd.f32 %v230_v32, %v214_v34 }
 0x115   :  { %v231_v39 = vadd.f32 %v230_v32, %v209_v36  ;;  %v1110_v40 = vpop.f32.mrb[2].mxu1 }
 0x116   :  { %v224_v41 = vadd.f32 %v1110_v40, %v67_v37  ;;  %v218_v42 = vpop.f32.mrb[3].mxu1  ;;  %v236_v43 = vmax.f32 %v232_v38, 0.0 }
 0x117   :  { %v235_v44 = vmax.f32 %v231_v39, 0.0  ;;  %v219_v45 = vadd.f32 %v218_v42, %v65_v27 }
 0x118   :  { %v234_v46 = vadd.f32 %v230_v32, %v224_v41  ;;  %v240_v47 = vadd.f32 1e-07, %v236_v43 }
 0x119   :  { %v239_v48 = vadd.f32 1e-07, %v235_v44  ;;  %v233_v49 = vadd.f32 %v230_v32, %v219_v45 }
 0x11a   :  { %v238_v50 = vmax.f32 %v234_v46, 0.0  ;;  %1246 = vrsqrt.f32 %v240_v47 }
 0x11b   :  { %1248 = vrsqrt.f32 %v239_v48  ;;  %v237_v51 = vmax.f32 %v233_v49, 0.0 }
 0x11c   :  { %v242_v52 = vadd.f32 1e-07, %v238_v50 }
 0x11d   :  { %v241_v53 = vadd.f32 1e-07, %v237_v51 }
 0x11e   :  { %1250 = vrsqrt.f32 %v242_v52 }
 0x11f   :  { %1252 = vrsqrt.f32 %v241_v53 }
 0x124   :  { %v1247_v57 = vpop.eup %1246 }
 0x125   :  { %v1249_v58 = vpop.eup %1248  ;;  %v248_v59 = vmin.f32 %v1247_v57, 5.0 }
 0x126   :  { %v247_v62 = vmin.f32 %v1249_v58, 5.0 }
 0x127   :  { %v261_v6 = vadd.f32 1e-09, %v248_v59 }
 0x128   :  { %v1251_v9 = vpop.eup %1250  ;;  %v260_v10 = vadd.f32 1e-09, %v247_v62 }
 0x129   :  { %v1253_v11 = vpop.eup %1252  ;;  %v265_v12 = vmul.f32 %v261_v6, %v1445_v60  ;;  %v250_v13 = vmin.f32 %v1251_v9, 5.0  ;;  %v456_v6 = vmul.f32 0.0, %v1419_v3 }
 0x12a   :  { %v264_v15 = vmul.f32 %v260_v10, %v1447_v63  ;;  %v249_v16 = vmin.f32 %v1253_v11, 5.0  ;;  %v455_v10 = vmul.f32 0.0, %v1417_v2 }
 0x12b   :  { %v276_v18 = vsel %vm268_vm1, %v265_v12, 0.0  ;;  %270 = vst.msk [vmem:[#allocation2 + $0x8] sm:$0xff] %vm268_vm1, %v265_v12  ;;  %v263_v19 = vadd.f32 1e-09, %v250_v13 }
 0x12c   :  { %277 = vadd.xlane.f32.xlu1 %v276_v18  ;;  %v273_v20 = vsel %vm268_vm1, %v264_v15, 0.0  ;;  %269 = vst.msk [vmem:[#allocation2] sm:$0xff] %vm268_vm1, %v264_v15  ;;  %v262_v21 = vadd.f32 1e-09, %v249_v16  ;;  %v458_v18 = vmul.f32 0.0, %v1432_v8 }
 0x12d   :  { %274 = vadd.xlane.f32.xlu0 %v273_v20  ;;  %v267_v22 = vmul.f32 %v263_v19, %v1450_v14 }
 0x12e   :  { %v266_v24 = vmul.f32 %v262_v21, %v1453_v17 }
 0x12f   :  { %272 = vst.msk [vmem:[#allocation2 + $0x18] sm:$0xff] %vm268_vm1, %v267_v22  ;;  %v282_v25 = vsel %vm268_vm1, %v267_v22, 0.0  ;;  %v457_v22 = vmul.f32 0.0, %v1430_v7 }
 0x130   :  { %283 = vadd.xlane.f32.xlu1 %v282_v25  ;;  %271 = vst.msk [vmem:[#allocation2 + $0x10] sm:$0xff] %vm268_vm1, %v266_v24  ;;  %v279_v27 = vsel %vm268_vm1, %v266_v24, 0.0 }
 0x131   :  { %280 = vadd.xlane.f32.xlu0 %v279_v27 }
 0x132   :  { %v355_v57 = vld [vmem:[#allocation2 + $0x8] sm:$0xff] }
 0x133   :  { %v354_v29 = vld [vmem:[#allocation2] sm:$0xff] }
 0x134   :  { %1119 = vmatprep.mubr.msk.f32.mxu0 %vm268_vm1, %v354_v29  ;;  %1133 = vmatprep.mubr.msk.f32.mxu1 %vm268_vm1, %v354_v29 }
 0x136   :  { %v357_v59 = vld [vmem:[#allocation2 + $0x18] sm:$0xff] }
 0x137   :  { %v356_v58 = vld [vmem:[#allocation2 + $0x10] sm:$0xff] }
 0x1b9   :  { %v278_v31 = vpop.xlane.xlu1 %277 }
 0x1ba   :  { %1254 = vrsqrt.f32 %v278_v31  ;;  %v275_v32 = vpop.xlane.xlu0 %274 }
 0x1bb   :  { %1256 = vrsqrt.f32 %v275_v32 }
 0x1bd   :  { %v284_v33 = vpop.xlane.xlu1 %283 }
 0x1be   :  { %1258 = vrsqrt.f32 %v284_v33  ;;  %v281_v34 = vpop.xlane.xlu0 %280 }
 0x1bf   :  { %1260 = vrsqrt.f32 %v281_v34 }
 0x1c4   :  { %v1255_v35 = vpop.eup %1254 }
 0x1c5   :  { %v1257_v36 = vpop.eup %1256  ;;  %295 = vst.msk [vmem:[#allocation3 + $0x8] sm:$0xff] %vm293_vm2, %v1255_v35 }
 0x1c6   :  { %294 = vst.msk [vmem:[#allocation3] sm:$0xff] %vm293_vm2, %v1257_v36 }
 0x1c8   :  { %v1259_v37 = vpop.eup %1258 }
 0x1c9   :  { %v1261_v38 = vpop.eup %1260  ;;  %297 = vst.msk [vmem:[#allocation3 + $0x18] sm:$0xff] %vm293_vm2, %v1259_v37 }
 0x1ca   :  { %296 = vst.msk [vmem:[#allocation3 + $0x10] sm:$0xff] %vm293_vm2, %v1261_v38 }
 0x1cc   :  { %v299_v39 = vld [vmem:[#allocation3 + $0x8] sm:$0xff] }
 0x1cd   :  { %309 = vperm.xlu1 %1245, %v299_v39   ;;  %v298_v40 = vld [vmem:[#allocation3] sm:$0xff]  ;;  %v323_v44 = vmul.f32 %v299_v39, %v299_v39 }
 0x1ce   :  { %304 = vperm.xlu0 %1244, %v298_v40   ;;  %v322_v43 = vmul.f32 %v298_v40, %v298_v40 }
 0x1d0   :  { %v301_v42 = vld [vmem:[#allocation3 + $0x18] sm:$0xff] }
 0x1d1   :  { %v300_v41 = vld [vmem:[#allocation3 + $0x10] sm:$0xff]  ;;  %v325_v46 = vmul.f32 %v301_v42, %v301_v42 }
 0x1d2   :  { %314 = vperm.xlu1 %1245, %v300_v41   ;;  %v324_v45 = vmul.f32 %v300_v41, %v300_v41 }
 0x1d6   :  { %319 = vperm.xlu1 %1245, %v301_v42  }
 0x1da   :  { %328 = vperm.xlu1 %1245, %v322_v43  }
 0x1de   :  { %333 = vperm.xlu1 %1245, %v323_v44  }
 0x1e2   :  { %338 = vperm.xlu1 %1245, %v324_v45  }
 0x1e6   :  { %343 = vperm.xlu1 %1245, %v325_v46  }
 0x24c   :  { %v1471_v47 = vpop.permute.xlu1 %309 }
 0x24d   :  { %v351_v48 = vmul.f32 %v1471_v47, %v1419_v3  ;;  %v1475_v49 = vpop.permute.xlu0 %304 }
 0x24e   :  { %v350_v50 = vmul.f32 %v1475_v49, %v1417_v2 }
 0x250   :  { %v1192_v51 = vpack.c.bf16 %v351_v48, %v350_v50 }
 0x251   :  { %v1479_v52 = vpop.permute.xlu1 %314 }
 0x252   :  { %1193 = vmatprep.subr.bf16.mxu0 %v1192_v51  ;;  %v352_v54 = vmul.f32 %v1479_v52, %v1430_v7 }
 0x253   :  { %1195 = vmatpush3.bf16.msra.mxu0 %v1192_v51 }
 0x255   :  { %v1481_v53 = vpop.permute.xlu1 %319 }
 0x256   :  { %v353_v55 = vmul.f32 %v1481_v53, %v1432_v8 }
 0x258   :  { %v1196_v56 = vpack.c.bf16 %v353_v55, %v352_v54 }
 0x259   :  { %v329_v61 = vpop.permute.xlu1 %328 }
 0x25a   :  { %1197 = vmatprep.subr.bf16.mxu0 %v1196_v56 }
 0x25b   :  { %1199 = vmatpush3.bf16.msra.mxu0 %v1196_v56 }
 0x25c   :  { %1208 = vmatprep.subr.bf16.mxu0 %v1354_v0 }
 0x25d   :  { %v334_v62 = vpop.permute.xlu1 %333 }
 0x25e   :  { %1120 = vmatmul.mubr.msk.f32.vlgmr.msra.gmra.mrb[2].mxu0 %vm268_vm1, %v355_v57  ;;  %v347_v15 = vmul.f32 %v334_v62, %v1419_v3 }
 0x25f   :  { %1122 = vmatprep.mubr.msk.f32.mxu0 %vm268_vm1, %v356_v58 }
 0x261   :  { %v339_v5 = vpop.permute.xlu1 %338 }
 0x262   :  { %1123 = vmatmul.mubr.msk.f32.gmra.mrb[4].mxu0 %vm268_vm1, %v357_v59  ;;  %v348_v34 = vmul.f32 %v339_v5, %v1430_v7 }
 0x263   :  { %1147 = vmatprep.mubr.msk.f32.mxu0 %vm1355_vm0, %v1356_v1  ;;  %v346_v1 = vmul.f32 %v329_v61, %v1417_v2 }
 0x265   :  { %v344_v19 = vpop.permute.xlu1 %343 }
 0x266   :  { %v349_v31 = vmul.f32 %v344_v19, %v1432_v8 }
 0x331   :  { %v1121_v9 = vpop.f32.mrb[2].mxu0 }
 0x332   :  { %v460_v11 = vmul.f32 %v1121_v9, %v1471_v47  ;;  %v436_v12 = vpop.f32.mrb[3].mxu0 }
 0x333   :  { %v459_v13 = vmul.f32 %v436_v12, %v1475_v49 }
 0x334   :  { %v464_v16 = vadd.f32 %v460_v11, %v456_v6 }
 0x335   :  { %v463_v20 = vadd.f32 %v459_v13, %v455_v10  ;;  %v1124_v21 = vpop.f32.mrb[4].mxu0 }
 0x336   :  { %v468_v24 = vadd.f32 %v464_v16, %v347_v15  ;;  %v462_v25 = vmul.f32 %v1124_v21, %v1481_v53  ;;  %v446_v27 = vpop.f32.mrb[5].mxu0 }
 0x337   :  { %v467_v29 = vadd.f32 %v463_v20, %v346_v1  ;;  %v461_v30 = vmul.f32 %v446_v27, %v1479_v52 }
 0x338   :  { %v466_v32 = vadd.f32 %v462_v25, %v458_v18  ;;  %v472_v33 = vmul.f32 %v468_v24, %v1471_v47  ;;  %v561_v44 = vmul.f32 0.0, %v468_v24 }
 0x339   :  { %v465_v35 = vadd.f32 %v461_v30, %v457_v22  ;;  %v471_v36 = vmul.f32 %v467_v29, %v1475_v49  ;;  %v560_v48 = vmul.f32 0.0, %v467_v29 }
 0x33a   :  { %v470_v37 = vadd.f32 %v466_v32, %v349_v31 }
 0x33b   :  { %v469_v38 = vadd.f32 %v465_v35, %v348_v34  ;;  %v1200_v39 = vpack.c.bf16 %v472_v33, %v471_v36 }
 0x33c   :  { %v474_v40 = vmul.f32 %v470_v37, %v1481_v53  ;;  %v563_v61 = vmul.f32 0.0, %v470_v37 }
 0x33d   :  { %1201 = vmatprep.subr.bf16.mxu1 %v1200_v39  ;;  %v473_v41 = vmul.f32 %v469_v38, %v1479_v52 }
 0x33e   :  { %1203 = vmatpush3.bf16.msra.mxu1 %v1200_v39 }
 0x33f   :  { %v1204_v42 = vpack.c.bf16 %v474_v40, %v473_v41 }
 0x341   :  { %1205 = vmatprep.subr.bf16.mxu1 %v1204_v42 }
 0x342   :  { %1207 = vmatpush3.bf16.msra.mxu1 %v1204_v42 }
 0x345   :  { %1134 = vmatmul.mubr.msk.f32.vlgmr.msra.gmra.mrb[4].mxu1 %vm268_vm1, %v355_v57 }
 0x346   :  { %1136 = vmatprep.mubr.msk.f32.mxu1 %vm268_vm1, %v356_v58 }
 0x349   :  { %1137 = vmatmul.mubr.msk.f32.gmra.mrb[6].mxu1 %vm268_vm1, %v357_v59  ;;  %v562_v59 = vmul.f32 0.0, %v469_v38 }
 0x418   :  { %v1135_v43 = vpop.f32.mrb[4].mxu1 }
 0x419   :  { %v565_v45 = vmul.f32 %v1135_v43, %v1471_v47  ;;  %v541_v46 = vpop.f32.mrb[5].mxu1 }
 0x41a   :  { %v564_v50 = vmul.f32 %v541_v46, %v1475_v49 }
 0x41b   :  { %v569_v51 = vadd.f32 %v565_v45, %v561_v44 }
 0x41c   :  { %v568_v54 = vadd.f32 %v564_v50, %v560_v48  ;;  %v1138_v55 = vpop.f32.mrb[6].mxu1 }
 0x41d   :  { %v1514_v56 = vadd.f32 %v569_v51, %v347_v15  ;;  %v567_v57 = vmul.f32 %v1138_v55, %v1481_v53  ;;  %v551_v62 = vpop.f32.mrb[7].mxu1 }
 0x41e   :  { %v1517_v58 = vadd.f32 %v568_v54, %v346_v1  ;;  %v566_v5 = vmul.f32 %v551_v62, %v1479_v52 }
 0x41f   :  { %v571_v6 = vadd.f32 %v567_v57, %v563_v61  ;;  %v584_v47 = vmul.f32 %v1424_v4, %v1514_v56 }
 0x420   :  { %v570_v9 = vadd.f32 %v566_v5, %v562_v59  ;;  %v583_v49 = vmul.f32 %v1424_v4, %v1517_v58 }
 0x421   :  { %v1524_v10 = vadd.f32 %v571_v6, %v349_v31  ;;  %v588_v11 = vmul.f32 %v584_v47, %v584_v47  ;;  %v670_v12 = vmul.f32 -2.0, %v584_v47 }
 0x422   :  { %v1526_v13 = vadd.f32 %v570_v9, %v348_v34  ;;  %1158 = vmatprep.mubr.f32.mxu1 %v583_v49  ;;  %v587_v53 = vmul.f32 %v583_v49, %v583_v49  ;;  %v669_v15 = vmul.f32 -2.0, %v583_v49 }
 0x423   :  { %593 = vadd.xlane.f32.xlu0 %v588_v11  ;;  %v586_v52 = vmul.f32 %v1424_v4, %v1524_v10 }
 0x424   :  { %591 = vadd.xlane.f32.xlu1 %v587_v53  ;;  %v1209_v16 = vpack.c.bf16 %v588_v11, %v587_v53  ;;  %v1214_v18 = vpack.c.bf16 %v670_v12, %v669_v15  ;;  %v585_v1 = vmul.f32 %v1424_v4, %v1526_v13 }
 0x425   :  { %v590_v19 = vmul.f32 %v586_v52, %v586_v52  ;;  %v672_v20 = vmul.f32 -2.0, %v586_v52 }
 0x426   :  { %1210 = vmatpush3.bf16.xpose.msra.mxu0 %v1209_v16  ;;  %1215 = vmatprep.subr.bf16.mxu1 %v1214_v18  ;;  %v589_v21 = vmul.f32 %v585_v1, %v585_v1  ;;  %v671_v22 = vmul.f32 -2.0, %v585_v1 }
 0x427   :  { %1217 = vmatpush3.bf16.xpose.msra.mxu1 %v1214_v18  ;;  %1211 = vmatprep.subr.bf16.mxu0 %v1354_v0 }
 0x428   :  { %597 = vadd.xlane.f32.xlu1 %v590_v19  ;;  %595 = vadd.xlane.f32.xlu0 %v589_v21  ;;  %v1218_v24 = vpack.c.bf16 %v672_v20, %v671_v22  ;;  %v1212_v25 = vpack.c.bf16 %v590_v19, %v589_v21 }
 0x42a   :  { %1219 = vmatprep.subr.bf16.mxu1 %v1218_v24 }
 0x42e   :  { %1213 = vmatpush3.bf16.xpose.msra.mxu0 %v1212_v25 }
 0x42f   :  { %1221 = vmatpush3.bf16.xpose.msra.mxu1 %v1218_v24 }
 0x435   :  { %1148 = vmatmul.mubr.f32.vlgmr.msra.gmra.mrb[6].mxu0 %v1357_v23 }
 0x436   :  { %1159 = vmatmul.mubr.f32.vlgmr.msra.gmra.mrb[8].mxu1 %v584_v47 }
 0x437   :  { %1161 = vmatprep.mubr.f32.mxu1 %v585_v1 }
 0x43a   :  { %1162 = vmatmul.mubr.f32.gmra.mrb[10].mxu1 %v586_v52 }
 0x4b0   :  { %v594_v27 = vpop.xlane.xlu0 %593 }
 0x4b1   :  { %v592_v4 = vpop.xlane.xlu1 %591 }
 0x4b5   :  { %v598_v36 = vpop.xlane.xlu1 %597  ;;  %v596_v39 = vpop.xlane.xlu0 %595 }
 0x508   :  { %v665_v29 = vpop.f32.mrb[6].mxu0 }
 0x509   :  { %v761_v30 = vrot.slane %v665_v29, %v229_v28  ;;  %v1160_v31 = vpop.f32.mrb[8].mxu1  ;;  %v1149_v0 = vpop.f32.mrb[7].mxu0 }
 0x50a   :  { %v745_v32 = vadd.f32 %v1160_v31, %v594_v27  ;;  %v739_v33 = vpop.f32.mrb[9].mxu1 }
 0x50b   :  { %v740_v34 = vadd.f32 %v739_v33, %v592_v4 }
 0x50c   :  { %v763_v35 = vadd.f32 %v761_v30, %v745_v32 }
 0x50d   :  { %v762_v37 = vadd.f32 %v761_v30, %v740_v34  ;;  %v1163_v38 = vpop.f32.mrb[10].mxu1 }
 0x50e   :  { %v767_v23 = vmax.f32 %v763_v35, 0.0  ;;  %v755_v40 = vadd.f32 %v1163_v38, %v598_v36  ;;  %v749_v41 = vpop.f32.mrb[11].mxu1 }
 0x50f   :  { %v766_v42 = vmax.f32 %v762_v37, 0.0  ;;  %v750_v43 = vadd.f32 %v749_v41, %v596_v39 }
 0x510   :  { %v771_v44 = vadd.f32 1e-07, %v767_v23  ;;  %v765_v45 = vadd.f32 %v761_v30, %v755_v40 }
 0x511   :  { %v770_v46 = vadd.f32 1e-07, %v766_v42  ;;  %v764_v26 = vadd.f32 %v761_v30, %v750_v43 }
 0x512   :  { %1262 = vrsqrt.f32 %v771_v44  ;;  %v769_v28 = vmax.f32 %v765_v45, 0.0 }
 0x513   :  { %1264 = vrsqrt.f32 %v770_v46  ;;  %v768_v48 = vmax.f32 %v764_v26, 0.0 }
 0x514   :  { %v773_v50 = vadd.f32 1e-07, %v769_v28 }
 0x515   :  { %v772_v51 = vadd.f32 1e-07, %v768_v48 }
 0x516   :  { %1266 = vrsqrt.f32 %v773_v50 }
 0x517   :  { %1268 = vrsqrt.f32 %v772_v51 }
 0x51c   :  { %v1263_v54 = vpop.eup %1262 }
 0x51d   :  { %v1265_v55 = vpop.eup %1264  ;;  %v779_v61 = vmin.f32 %v1263_v54, 5.0  ;;  %v985_v54 = vmul.f32 0.0, %v1514_v56 }
 0x51e   :  { %v778_v57 = vmin.f32 %v1265_v55, 5.0 }
 0x51f   :  { %v792_v62 = vadd.f32 1e-09, %v779_v61  ;;  %v987_v61 = vmul.f32 0.0, %v1524_v10 }
 0x520   :  { %v1267_v59 = vpop.eup %1266  ;;  %v791_v5 = vadd.f32 1e-09, %v778_v57 }
 0x521   :  { %v1269_v6 = vpop.eup %1268  ;;  %v796_v47 = vmul.f32 %v792_v62, %v1445_v60  ;;  %v781_v9 = vmin.f32 %v1267_v59, 5.0 }
 0x522   :  { %v795_v49 = vmul.f32 %v791_v5, %v1447_v63  ;;  %v780_v11 = vmin.f32 %v1269_v6, 5.0  ;;  %v984_v5 = vmul.f32 0.0, %v1517_v58 }
 0x523   :  { %v806_v12 = vsel %vm268_vm1, %v796_v47, 0.0  ;;  %800 = vst.msk [vmem:[#allocation2 + $0x8] sm:$0xff] %vm268_vm1, %v796_v47  ;;  %v794_v53 = vadd.f32 1e-09, %v781_v9  ;;  %v986_v47 = vmul.f32 0.0, %v1526_v13 }
 0x524   :  { %807 = vadd.xlane.f32.xlu1 %v806_v12  ;;  %v803_v15 = vsel %vm268_vm1, %v795_v49, 0.0  ;;  %799 = vst.msk [vmem:[#allocation2] sm:$0xff] %vm268_vm1, %v795_v49  ;;  %v793_v52 = vadd.f32 1e-09, %v780_v11 }
 0x525   :  { %804 = vadd.xlane.f32.xlu0 %v803_v15  ;;  %v798_v16 = vmul.f32 %v794_v53, %v1450_v14 }
 0x526   :  { %v797_v60 = vmul.f32 %v793_v52, %v1453_v17 }
 0x527   :  { %802 = vst.msk [vmem:[#allocation2 + $0x18] sm:$0xff] %vm268_vm1, %v798_v16  ;;  %v812_v63 = vsel %vm268_vm1, %v798_v16, 0.0 }
 0x528   :  { %813 = vadd.xlane.f32.xlu1 %v812_v63  ;;  %801 = vst.msk [vmem:[#allocation2 + $0x10] sm:$0xff] %vm268_vm1, %v797_v60  ;;  %v809_v18 = vsel %vm268_vm1, %v797_v60, 0.0 }
 0x529   :  { %810 = vadd.xlane.f32.xlu0 %v809_v18 }
 0x52a   :  { %v884_v44 = vld [vmem:[#allocation2 + $0x8] sm:$0xff] }
 0x52b   :  { %v883_v1 = vld [vmem:[#allocation2] sm:$0xff] }
 0x52c   :  { %1172 = vmatprep.mubr.msk.f32.mxu0 %vm268_vm1, %v883_v1 }
 0x52e   :  { %v886_v45 = vld [vmem:[#allocation2 + $0x18] sm:$0xff] }
 0x52f   :  { %v885_v19 = vld [vmem:[#allocation2 + $0x10] sm:$0xff] }
 0x530   :  { %1175 = vmatprep.mubr.msk.f32.mxu1 %vm268_vm1, %v885_v19 }
 0x5b1   :  { %v808_v20 = vpop.xlane.xlu1 %807 }
 0x5b2   :  { %1270 = vrsqrt.f32 %v808_v20  ;;  %v805_v14 = vpop.xlane.xlu0 %804 }
 0x5b3   :  { %1272 = vrsqrt.f32 %v805_v14 }
 0x5b5   :  { %v814_v17 = vpop.xlane.xlu1 %813 }
 0x5b6   :  { %1274 = vrsqrt.f32 %v814_v17  ;;  %v811_v21 = vpop.xlane.xlu0 %810 }
 0x5b7   :  { %1276 = vrsqrt.f32 %v811_v21 }
 0x5bc   :  { %v1271_v22 = vpop.eup %1270 }
 0x5bd   :  { %v1273_v24 = vpop.eup %1272  ;;  %824 = vst.msk [vmem:[#allocation3 + $0x8] sm:$0xff] %vm293_vm2, %v1271_v22 }
 0x5be   :  { %823 = vst.msk [vmem:[#allocation3] sm:$0xff] %vm293_vm2, %v1273_v24 }
 0x5c0   :  { %v1275_v25 = vpop.eup %1274 }
 0x5c1   :  { %v1277_v4 = vpop.eup %1276  ;;  %826 = vst.msk [vmem:[#allocation3 + $0x18] sm:$0xff] %vm293_vm2, %v1275_v25 }
 0x5c2   :  { %825 = vst.msk [vmem:[#allocation3 + $0x10] sm:$0xff] %vm293_vm2, %v1277_v4 }
 0x5c4   :  { %v828_v27 = vld [vmem:[#allocation3 + $0x8] sm:$0xff] }
 0x5c5   :  { %838 = vperm.xlu1 %1245, %v828_v27   ;;  %v827_v29 = vld [vmem:[#allocation3] sm:$0xff]  ;;  %v852_v0 = vmul.f32 %v828_v27, %v828_v27 }
 0x5c6   :  { %833 = vperm.xlu0 %1244, %v827_v29   ;;  %v851_v32 = vmul.f32 %v827_v29, %v827_v29 }
 0x5c8   :  { %v830_v30 = vld [vmem:[#allocation3 + $0x18] sm:$0xff] }
 0x5c9   :  { %v829_v31 = vld [vmem:[#allocation3 + $0x10] sm:$0xff]  ;;  %v854_v33 = vmul.f32 %v830_v30, %v830_v30 }
 0x5ca   :  { %848 = vperm.xlu0 %1244, %v830_v30   ;;  %843 = vperm.xlu1 %1245, %v829_v31   ;;  %v853_v34 = vmul.f32 %v829_v31, %v829_v31 }
 0x5ce   :  { %862 = vperm.xlu0 %1244, %v852_v0   ;;  %857 = vperm.xlu1 %1245, %v851_v32  }
 0x5d2   :  { %872 = vperm.xlu0 %1244, %v854_v33   ;;  %867 = vperm.xlu1 %1245, %v853_v34  }
 0x644   :  { %v839_v35 = vpop.permute.xlu1 %838 }
 0x645   :  { %v880_v36 = vmul.f32 %v839_v35, %v1514_v56  ;;  %v834_v37 = vpop.permute.xlu0 %833 }
 0x646   :  { %v879_v38 = vmul.f32 %v834_v37, %v1517_v58 }
 0x648   :  { %v1222_v39 = vpack.c.bf16 %v880_v36, %v879_v38 }
 0x649   :  { %v844_v23 = vpop.permute.xlu1 %843  ;;  %v849_v40 = vpop.permute.xlu0 %848 }
 0x64a   :  { %v881_v41 = vmul.f32 %v844_v23, %v1526_v13  ;;  %v882_v42 = vmul.f32 %v849_v40, %v1524_v10  ;;  %1223 = vmatprep.subr.bf16.mxu0 %v1222_v39  ;;  %1230 = vmatprep.subr.bf16.mxu1 %v1222_v39 }
 0x64b   :  { %1225 = vmatpush3.bf16.msra.mxu0 %v1222_v39  ;;  %1232 = vmatpush3.bf16.msra.mxu1 %v1222_v39 }
 0x64c   :  { %v1226_v43 = vpack.c.bf16 %v882_v42, %v881_v41 }
 0x64d   :  { %v858_v46 = vpop.permute.xlu1 %857  ;;  %v863_v26 = vpop.permute.xlu0 %862 }
 0x64e   :  { %1227 = vmatprep.subr.bf16.mxu0 %v1226_v43  ;;  %1231 = vmatprep.subr.bf16.mxu1 %v1226_v43  ;;  %v876_v49 = vmul.f32 %v863_v26, %v1419_v3  ;;  %v875_v56 = vmul.f32 %v858_v46, %v1417_v2 }
 0x64f   :  { %1229 = vmatpush3.bf16.msra.mxu0 %v1226_v43  ;;  %1233 = vmatpush3.bf16.msra.mxu1 %v1226_v43 }
 0x651   :  { %v868_v28 = vpop.permute.xlu1 %867  ;;  %v873_v48 = vpop.permute.xlu0 %872 }
 0x652   :  { %1173 = vmatmul.mubr.msk.f32.vlgmr.msra.gmra.mrb[8].mxu0 %vm268_vm1, %v884_v44  ;;  %1176 = vmatmul.mubr.msk.f32.vlgmr.msra.gmra.mrb[12].mxu1 %vm268_vm1, %v886_v45  ;;  %v878_v11 = vmul.f32 %v873_v48, %v1432_v8  ;;  %v877_v10 = vmul.f32 %v868_v28, %v1430_v7 }
 0x725   :  { %v1174_v50 = vpop.f32.mrb[8].mxu0  ;;  %v1177_v51 = vpop.f32.mrb[12].mxu1 }
 0x726   :  { %v989_v55 = vmul.f32 %v1174_v50, %v839_v35  ;;  %v991_v57 = vmul.f32 %v1177_v51, %v849_v40  ;;  %v965_v62 = vpop.f32.mrb[9].mxu0  ;;  %v975_v59 = vpop.f32.mrb[13].mxu1 }
 0x727   :  { %v988_v6 = vmul.f32 %v965_v62, %v834_v37  ;;  %v990_v9 = vmul.f32 %v975_v59, %v844_v23 }
 0x728   :  { %v993_v12 = vadd.f32 %v989_v55, %v985_v54  ;;  %v995_v53 = vadd.f32 %v991_v57, %v987_v61 }
 0x729   :  { %v992_v15 = vadd.f32 %v988_v6, %v984_v5  ;;  %v994_v52 = vadd.f32 %v990_v9, %v986_v47 }
 0x72a   :  { %v997_v16 = vadd.f32 %v993_v12, %v876_v49  ;;  %v999_v58 = vadd.f32 %v995_v53, %v878_v11 }
 0x72b   :  { %v996_v60 = vadd.f32 %v992_v15, %v875_v56  ;;  %v998_v63 = vadd.f32 %v994_v52, %v877_v10 }
 0x72c   :  { %1001 = vst [vmem:[#allocation9 + $0x8] sm:$0xff] %v997_v16  ;;  %1003 = vst [vmem:[#allocation9 + $0x18] sm:$0xff] %v999_v58 }
 0x72d   :  { %1000 = vst [vmem:[#allocation9] sm:$0xff] %v996_v60  ;;  %1002 = vst [vmem:[#allocation9 + $0x10] sm:$0xff] %v998_v63 }
 0x72e   :  { %1333 = shalt.err (!%p1330_p6)
}
 0x72f   :  { %s1334_s15 = scalar_lea.hbm %s1586_s3, 512 }
 0x730   :  { %p1335_p7 = scmp.ne.s32.totalorder %s1586_s3, %s1334_s15  ;;  %p1338_p8 = scmp.lt.u32.totalorder %s1334_s15, %s1586_s3 }
 0x732   :  { %p1340_p9 = pnand %p1338_p8, %p1335_p7 }
 0x734   :  { %1343 = shalt.err (!%p1340_p9)
}
 0x735   :  { %1015 = dma.vmem_to_hbm [thread:$0]  %s1010_s2, 512, %s1586_s3, [#allocation6], %s1352_s0, %s1352_s0, %s1353_s7  }
 0x736   :  { %1348 = dma.done.wait [#allocation6], 512  }
 0x737   :  { %1349 = vsyncadd [#allocation6], 4294966784 }
 0x738   :  { %1019 = vsyncpa [#allocation5], 1 }
 0x739   :  { %1020 = vsyncpa [#allocation8], 1 }
 0x73a   :  { %1021 = vsyncpa [#allocation6], 1 }

</bundles_post_ra>
